<compile_context>
chip_gen: v6e
topology: v6e:2x2x1
jax: 0.10.0
libtpu: 0.0.40
codegen_flags: <defaults>
</compile_context>

<pallas_src>
import functools

import jax
import jax.numpy as jnp
from jax.experimental import pallas as pl
from jax.experimental.pallas import tpu as pltpu


def _round_up(x, m):
    return (x + m - 1) // m * m


def _vmem_capacity_bytes():
    """Generation-aware VMEM capacity (v5e/v6e: 128 MiB, v7x: 64 MiB)."""
    try:
        cap = getattr(pltpu.get_tpu_info(), "vmem_capacity_bytes", None)
        if cap:
            return int(cap)
    except Exception:
        pass
    return 64 << 20  # conservative default (v7x-sized)


def _choose_tiles(B, C, itemsize):
    """Pick (block_rows, block_c) for the (row-tile, class-tile) grid."""
    sub = {4: 8, 2: 16, 1: 32}.get(itemsize, 8)  # min sublane tile per dtype

    # Class axis: one block for typical classifier sizes; 128-multiple chunks
    # for vocab-scale C so the row tile stays large and lane-dense.
    block_c = C if C <= 8192 else 2048
    c_lanes = _round_up(block_c, 128)

    # Row tile: biggest multiple of `sub` whose double-buffered pred tile plus
    # ~3 tile-sized f32 intermediates fits the per-generation budget.
    budget = min(32 << 20, _vmem_capacity_bytes() // 4)
    per_row = c_lanes * (2 * itemsize + 12)
    cap = max(sub, (budget // per_row) // sub * sub)
    cap = min(cap, 1024)

    b_pad = _round_up(B, sub)
    if b_pad > sub:
        # Keep >= 2 row tiles so dimension_semantics=("parallel", ...) can use
        # both TensorCores on v7x (and megacore on earlier generations).
        cap = min(cap, _round_up(pl.cdiv(b_pad, 2), sub))
    block_rows = max(sub, min(cap, b_pad))
    return block_rows, block_c


def _label_smoothing_kernel(pred_ref, tgt_ref, loss_ref, m_sc, s_sc, w_sc, *,
                            C, block_c, smooth, confidence):
    j = pl.program_id(1)            # class-tile index ("arbitrary", innermost)
    nj = pl.num_programs(1)

    @pl.when(j == 0)
    def _():
        m_sc[...] = jnp.full_like(m_sc, -jnp.inf)
        s_sc[...] = jnp.zeros_like(s_sc)
        w_sc[...] = jnp.zeros_like(w_sc)

    p = pred_ref[...].astype(jnp.float32)                        # (TB, TC)
    tgt = tgt_ref[...]                                           # (TB, 1) int32

    # Folded label-smoothing weights: w_c = confidence at the target class and
    # smooth elsewhere, so  row_loss = logsumexp(p) - sum_c(w_c * p_c)
    # (because sum_c(w_c) == 1).
    col = j * block_c + jax.lax.broadcasted_iota(jnp.int32, p.shape, 1)
    w = jnp.where(col == tgt, jnp.float32(confidence), jnp.float32(smooth))
    if C % block_c != 0:            # ragged last class tile: mask padded cols
        col_ok = col < C
        w = jnp.where(col_ok, w, jnp.float32(0.0))
        p = jnp.where(col_ok, p, jnp.float32(-1e30))

    # Online (streaming) logsumexp + weighted sum over class chunks.
    m_prev = m_sc[...]
    m_new = jnp.maximum(m_prev, jnp.max(p, axis=-1, keepdims=True))
    s_sc[...] = (s_sc[...] * jnp.exp(m_prev - m_new)
                 + jnp.sum(jnp.exp(p - m_new), axis=-1, keepdims=True))
    w_sc[...] = w_sc[...] + jnp.sum(p * w, axis=-1, keepdims=True)
    m_sc[...] = m_new

    @pl.when(j == nj - 1)
    def _():
        # Per-row loss; rows past B in a ragged last row tile are discarded by
        # Pallas on write-back, so no explicit row mask is needed.
        loss_ref[...] = m_sc[...] + jnp.log(s_sc[...]) - w_sc[...]


def label_smoothing_loss(pred, target, *, classes, smoothing=0.1,
                         block_rows=None, block_c=None):
    """pred: (B, C) float (f32/bf16); target: (B,) int. Returns scalar f32."""
    assert pred.ndim == 2 and pred.shape[-1] == classes
    B, C = pred.shape
    itemsize = jnp.dtype(pred.dtype).itemsize
    sub = {4: 8, 2: 16, 1: 32}.get(itemsize, 8)

    auto_rows, auto_c = _choose_tiles(B, C, itemsize)
    block_rows = int(block_rows or auto_rows)
    block_c = int(block_c or auto_c)
    assert block_rows % sub == 0, "row tile must be a multiple of the min sublane tile"
    assert block_c == C or block_c % 128 == 0, "class tile must be 128-aligned or full"

    grid = (pl.cdiv(B, block_rows), pl.cdiv(C, block_c))

    confidence = 1.0 - smoothing
    smooth = smoothing / (classes - 1)
    tgt2d = target.astype(jnp.int32).reshape(B, 1)

    # VMEM accounting with lane/sublane-padded buffer sizes.
    c_lanes = _round_up(block_c, 128)
    needed = (block_rows * c_lanes * (2 * itemsize + 12)  # pred DB + f32 temps
              + 2 * block_rows * 128 * 4                  # target DB (lane-padded)
              + 2 * block_rows * 128 * 4                  # per-row output DB (lane-padded)
              + 3 * block_rows * 128 * 4)                 # m/s/wsum scratch (lane-padded)
    vmem_cap = _vmem_capacity_bytes()
    vmem_limit = min(max(int(needed * 1.25) + (2 << 20), 16 << 20), vmem_cap)

    kernel = functools.partial(
        _label_smoothing_kernel,
        C=C, block_c=block_c,
        smooth=float(smooth), confidence=float(confidence))

    per_row = pl.pallas_call(
        kernel,
        out_shape=jax.ShapeDtypeStruct((B, 1), jnp.float32),
        grid_spec=pltpu.PrefetchScalarGridSpec(
            num_scalar_prefetch=0,
            grid=grid,
            in_specs=[
                pl.BlockSpec((block_rows, block_c), lambda i, j: (i, j)),  # pred
                pl.BlockSpec((block_rows, 1), lambda i, j: (i, 0)),        # target
            ],
            # Output bytes are tiny (B*4); the narrow last dim is accepted as
            # the cheap option here vs. an extra in-kernel transpose.
            out_specs=pl.BlockSpec((block_rows, 1), lambda i, j: (i, 0)),
            scratch_shapes=[pltpu.VMEM((block_rows, 1), jnp.float32)] * 3,
        ),
        compiler_params=pltpu.CompilerParams(
            dimension_semantics=("parallel", "arbitrary"),
            vmem_limit_bytes=int(vmem_limit),
        ),
    )(pred, tgt2d)

    # Final mean over the batch in the wrapper (keeps the row grid parallel).
    return jnp.mean(per_row)


def _reference(pred, target, classes, smoothing):
    logp = jax.nn.log_softmax(pred.astype(jnp.float32), axis=-1)
    smooth = smoothing / (classes - 1)
    B = pred.shape[0]
    true_dist = jnp.full(pred.shape, smooth, jnp.float32)
    true_dist = true_dist.at[jnp.arange(B), target].set(1.0 - smoothing)
    return jnp.mean(jnp.sum(-true_dist * logp, axis=-1))


if __name__ == "__main__":
    key = jax.random.PRNGKey(0)

    # Primary small example: batch of 16 logits over 32 classes.
    B, C = 16, 32
    k1, k2, k3, k4 = jax.random.split(key, 4)
    pred = jax.random.normal(k1, (B, C), dtype=jnp.float32)
    target = jax.random.randint(k2, (B,), 0, C, dtype=jnp.int32)

    loss = label_smoothing_loss(pred, target, classes=C, smoothing=0.1)
    jax.block_until_ready(loss)
    ref = _reference(pred, target, C, 0.1)
    assert jnp.allclose(loss, ref, atol=1e-4, rtol=1e-4), (loss, ref)

    # Secondary check: ragged rows + chunked/ragged class axis (streaming path).
    B2, C2 = 10, 300
    pred2 = jax.random.normal(k3, (B2, C2), dtype=jnp.float32)
    target2 = jax.random.randint(k4, (B2,), 0, C2, dtype=jnp.int32)
    loss2 = label_smoothing_loss(pred2, target2, classes=C2, smoothing=0.1,
                                 block_rows=8, block_c=128)
    jax.block_until_ready(loss2)
    ref2 = _reference(pred2, target2, C2, 0.1)
    assert jnp.allclose(loss2, ref2, atol=1e-4, rtol=1e-4), (loss2, ref2)

    print("KERNEL_OK")
</pallas_src>

<mosaic_0001>
module attributes {stable_mosaic.version = 11 : i64} {
  func.func @_label_smoothing_kernel(%arg0: i32, %arg1: i32, %arg2: memref<8x32xf32, #tpu.memory_space<vmem>>, %arg3: memref<8x1xi32, #tpu.memory_space<vmem>>, %arg4: memref<8x1xf32, #tpu.memory_space<vmem>>, %arg5: memref<8x1xf32, #tpu.memory_space<vmem>>, %arg6: memref<8x1xf32, #tpu.memory_space<vmem>>, %arg7: memref<8x1xf32, #tpu.memory_space<vmem>>) attributes {dimension_semantics = [#tpu.dimension_semantics<parallel>, #tpu.dimension_semantics<arbitrary>], iteration_bounds = array<i64: 2, 1>, scalar_prefetch = 0 : i64, scratch_operands = 3 : i64, tpu.core_type = #tpu.core_type<tc>, window_params = [{transform_indices = @transform_0, window_bounds = array<i64: 8, 32>}, {transform_indices = @transform_1, window_bounds = array<i64: 8, 1>}, {transform_indices = @transform_2, window_bounds = array<i64: 8, 1>}]} {
    %c0_i32 = arith.constant 0 : i32
    %0 = arith.cmpi eq, %arg1, %c0_i32 : i32
    %1 = arith.extui %0 : i1 to i32
    %c0_i32_0 = arith.constant 0 : i32
    %2 = arith.cmpi ne, %1, %c0_i32_0 : i32
    scf.if %2 {
      %cst_22 = arith.constant 0xFF800000 : f32
      %39 = vector.broadcast %cst_22 : f32 to vector<8x1xf32>
      %c0_23 = arith.constant 0 : index
      %c0_24 = arith.constant 0 : index
      %40 = vector.load %arg5[%c0_23, %c0_24] : memref<8x1xf32, #tpu.memory_space<vmem>>, vector<8x1xf32>
      tpu.vector_store %arg5[%c0_23, %c0_24], %39 {strides = array<i32>} : memref<8x1xf32, #tpu.memory_space<vmem>>, vector<8x1xf32>,
      %cst_25 = arith.constant 0.000000e+00 : f32
      %41 = vector.broadcast %cst_25 : f32 to vector<8x1xf32>
      %c0_26 = arith.constant 0 : index
      %c0_27 = arith.constant 0 : index
      %42 = vector.load %arg6[%c0_26, %c0_27] : memref<8x1xf32, #tpu.memory_space<vmem>>, vector<8x1xf32>
      tpu.vector_store %arg6[%c0_26, %c0_27], %41 {strides = array<i32>} : memref<8x1xf32, #tpu.memory_space<vmem>>, vector<8x1xf32>,
      %cst_28 = arith.constant 0.000000e+00 : f32
      %43 = vector.broadcast %cst_28 : f32 to vector<8x1xf32>
      %c0_29 = arith.constant 0 : index
      %c0_30 = arith.constant 0 : index
      %44 = vector.load %arg7[%c0_29, %c0_30] : memref<8x1xf32, #tpu.memory_space<vmem>>, vector<8x1xf32>
      tpu.vector_store %arg7[%c0_29, %c0_30], %43 {strides = array<i32>} : memref<8x1xf32, #tpu.memory_space<vmem>>, vector<8x1xf32>,
    } else {
    }
    %c0 = arith.constant 0 : index
    %c0_1 = arith.constant 0 : index
    %3 = vector.load %arg2[%c0, %c0_1] : memref<8x32xf32, #tpu.memory_space<vmem>>, vector<8x32xf32>
    %c0_2 = arith.constant 0 : index
    %c0_3 = arith.constant 0 : index
    %4 = vector.load %arg3[%c0_2, %c0_3] : memref<8x1xi32, #tpu.memory_space<vmem>>, vector<8x1xi32>
    %c32_i32 = arith.constant 32 : i32
    %5 = arith.muli %arg1, %c32_i32 : i32
    %6 = tpu.iota {dimensions = array<i32: 1>} : vector<8x32xi32>
    %7 = vector.broadcast %5 : i32 to vector<8x32xi32>
    %8 = arith.addi %7, %6 : vector<8x32xi32>
    %9 = vector.broadcast %4 : vector<8x1xi32> to vector<8x32xi32>
    %10 = arith.cmpi eq, %8, %9 : vector<8x32xi32>
    %cst = arith.constant 0.899999976 : f32
    %cst_4 = arith.constant 0.0032258064 : f32
    %11 = vector.broadcast %cst : f32 to vector<8x32xf32>
    %12 = vector.broadcast %cst_4 : f32 to vector<8x32xf32>
    %13 = arith.select %10, %11, %12 : vector<8x32xi1>, vector<8x32xf32>
    %c0_5 = arith.constant 0 : index
    %c0_6 = arith.constant 0 : index
    %14 = vector.load %arg5[%c0_5, %c0_6] : memref<8x1xf32, #tpu.memory_space<vmem>>, vector<8x1xf32>
    %cst_7 = arith.constant dense<0xFF800000> : vector<8xf32>
    %15 = vector.multi_reduction <maximumf>, %3, %cst_7 [1] : vector<8x32xf32> to vector<8xf32>
    %16 = vector.shape_cast %15 : vector<8xf32> to vector<8x1xf32>
    %17 = arith.maximumf %14, %16 : vector<8x1xf32>
    %c0_8 = arith.constant 0 : index
    %c0_9 = arith.constant 0 : index
    %18 = vector.load %arg6[%c0_8, %c0_9] : memref<8x1xf32, #tpu.memory_space<vmem>>, vector<8x1xf32>
    %19 = arith.subf %14, %17 : vector<8x1xf32>
    %20 = math.exp %19 : vector<8x1xf32>
    %21 = arith.mulf %18, %20 : vector<8x1xf32>
    %22 = vector.broadcast %17 : vector<8x1xf32> to vector<8x32xf32>
    %23 = arith.subf %3, %22 : vector<8x32xf32>
    %24 = math.exp %23 : vector<8x32xf32>
    %cst_10 = arith.constant dense<0.000000e+00> : vector<8xf32>
    %25 = vector.multi_reduction <add>, %24, %cst_10 [1] : vector<8x32xf32> to vector<8xf32>
    %26 = vector.shape_cast %25 : vector<8xf32> to vector<8x1xf32>
    %27 = arith.addf %21, %26 : vector<8x1xf32>
    %c0_11 = arith.constant 0 : index
    %c0_12 = arith.constant 0 : index
    %28 = vector.load %arg6[%c0_11, %c0_12] : memref<8x1xf32, #tpu.memory_space<vmem>>, vector<8x1xf32>
    tpu.vector_store %arg6[%c0_11, %c0_12], %27 {strides = array<i32>} : memref<8x1xf32, #tpu.memory_space<vmem>>, vector<8x1xf32>,
    %c0_13 = arith.constant 0 : index
    %c0_14 = arith.constant 0 : index
    %29 = vector.load %arg7[%c0_13, %c0_14] : memref<8x1xf32, #tpu.memory_space<vmem>>, vector<8x1xf32>
    %30 = arith.mulf %3, %13 : vector<8x32xf32>
    %cst_15 = arith.constant dense<0.000000e+00> : vector<8xf32>
    %31 = vector.multi_reduction <add>, %30, %cst_15 [1] : vector<8x32xf32> to vector<8xf32>
    %32 = vector.shape_cast %31 : vector<8xf32> to vector<8x1xf32>
    %33 = arith.addf %29, %32 : vector<8x1xf32>
    %c0_16 = arith.constant 0 : index
    %c0_17 = arith.constant 0 : index
    %34 = vector.load %arg7[%c0_16, %c0_17] : memref<8x1xf32, #tpu.memory_space<vmem>>, vector<8x1xf32>
    tpu.vector_store %arg7[%c0_16, %c0_17], %33 {strides = array<i32>} : memref<8x1xf32, #tpu.memory_space<vmem>>, vector<8x1xf32>,
    %c0_18 = arith.constant 0 : index
    %c0_19 = arith.constant 0 : index
    %35 = vector.load %arg5[%c0_18, %c0_19] : memref<8x1xf32, #tpu.memory_space<vmem>>, vector<8x1xf32>
    tpu.vector_store %arg5[%c0_18, %c0_19], %17 {strides = array<i32>} : memref<8x1xf32, #tpu.memory_space<vmem>>, vector<8x1xf32>,
    %c0_i32_20 = arith.constant 0 : i32
    %36 = arith.cmpi eq, %arg1, %c0_i32_20 : i32
    %37 = arith.extui %36 : i1 to i32
    %c0_i32_21 = arith.constant 0 : i32
    %38 = arith.cmpi ne, %37, %c0_i32_21 : i32
    scf.if %38 {
      %c0_22 = arith.constant 0 : index
      %c0_23 = arith.constant 0 : index
      %39 = vector.load %arg5[%c0_22, %c0_23] : memref<8x1xf32, #tpu.memory_space<vmem>>, vector<8x1xf32>
      %c0_24 = arith.constant 0 : index
      %c0_25 = arith.constant 0 : index
      %40 = vector.load %arg6[%c0_24, %c0_25] : memref<8x1xf32, #tpu.memory_space<vmem>>, vector<8x1xf32>
      %41 = math.log %40 : vector<8x1xf32>
      %42 = arith.addf %39, %41 : vector<8x1xf32>
      %c0_26 = arith.constant 0 : index
      %c0_27 = arith.constant 0 : index
      %43 = vector.load %arg7[%c0_26, %c0_27] : memref<8x1xf32, #tpu.memory_space<vmem>>, vector<8x1xf32>
      %44 = arith.subf %42, %43 : vector<8x1xf32>
      %c0_28 = arith.constant 0 : index
      %c0_29 = arith.constant 0 : index
      %45 = vector.load %arg4[%c0_28, %c0_29] : memref<8x1xf32, #tpu.memory_space<vmem>>, vector<8x1xf32>
      tpu.vector_store %arg4[%c0_28, %c0_29], %44 {strides = array<i32>} : memref<8x1xf32, #tpu.memory_space<vmem>>, vector<8x1xf32>,
    } else {
    }
    return
  }
  func.func @transform_0(%arg0: i32, %arg1: i32) -> (i32, i32) {
    %c0_i32 = arith.constant 0 : i32
    return %arg0, %arg1 : i32, i32
  }
  func.func @transform_1(%arg0: i32, %arg1: i32) -> (i32, i32) {
    %c0_i32 = arith.constant 0 : i32
    %c0_i32_0 = arith.constant 0 : i32
    return %arg0, %c0_i32 : i32, i32
  }
  func.func @transform_2(%arg0: i32, %arg1: i32) -> (i32, i32) {
    %c0_i32 = arith.constant 0 : i32
    %c0_i32_0 = arith.constant 0 : i32
    return %arg0, %c0_i32 : i32, i32
  }
}

</mosaic_0001>

<bundles_post_ra>
// kernel: tpu_custom_call.1
= control target key start
LH: loop header
LB: loop body
LE: loop exit
PB: predicated region body
PF: predicated region fallthrough
CT: control target
= control target key end

     0   :  { %s408_s9 = smov 0   ;;  %s410_s10 = smov 0   ;;  %s459_s0 = inlined_call_operand.vmem [shape: f32[16,32], index: 0, kind: input, shape index: {}]   ;;  %s460_s1 = inlined_call_operand.vmem [shape: s32[16,1], index: 1, kind: input, shape index: {}]   ;;  %s461_s2 = inlined_call_operand.vmem [shape: f32[16,1], index: 2, kind: output, shape index: {}]  }
   0x1   :  { %s412_s11 = smov 0  }
   0x2 LB: > { %s24_s12 = sadd.s32 1, %s383_s10  ;;  %p323_p0 = scmp.ge.s32.totalorder %s387_s11, 1  ;;  %s387_s11 = sphi %s412_s11, %s12_s11   ;;  %s383_s10 = sphi %s410_s10, %s463_s10   ;;  %s379_s9 = sphi %s408_s9, %s462_s9  }
   0x3   : > { %p26_p1 = scmp.ge.s32.totalorder %s24_s12, 2  ;;  %p137_p2 = scmp.lt.s32.totalorder %s387_s11, 3 }
   0x5   : > { %s465_s12 = smov (%p26_p1, %s24_s12), 0  ;;  %p138_p3 = pnand %p323_p0, %p137_p2 }
   0x6   : > { %p164_p4 = scmp.lt.s32.totalorder (!%p138_p3), %s379_s9, 1 }
   0x7   : > { %141 = sbr.rel (%p138_p3) target bundleno = 469 (0x1d5), region = 28 }
   0xc   : > { %vm183_vm0 = vcmask 7168   ;;  %v389_v0 = vmov -inf   ;;  %s467_s9 = smov (!%p164_p4, %s379_s9), 1  ;;  %vm200_vm1 = vcmask 261120   ;;  %v390_v3 = vmov 0  }
   0xd   : > { %184 = vst.msk [vmem:[#allocation2] sm:$0xff] %vm183_vm0, %v389_v0  ;;  %s427_s13 = sshll.u32 %s467_s9, 3  ;;  %357 = vset.pattern.permute.xlu0 %v390_v3  ;;  %358 = vset.pattern.permute.xlu1 %v390_v3  ;;  %v391_v5 = vmov 0.0   ;;  %v190_v13 = vlaneseq  ;;  %v392_v16 = vmov 0.0032258064  }
   0xe   : > { %s170_s16 = scalar_lea.vmem %s459_s0, %s427_s13  ;;  %s174_s19 = scalar_lea.vmem %s460_s1, %s427_s13  ;;  %185 = vst.msk [vmem:[#allocation3] sm:$0xff] %vm183_vm0, %v391_v5  ;;  %186 = vst.msk [vmem:[#allocation4] sm:$0xff] %vm183_vm0, %v391_v5 }
   0xf   : > { %v187_v1 = vld [vmem:[%s170_s16] sm:$0xff]  ;;  %v191_v14 = vand.u32 127, %v190_v13  ;;  %s178_s22 = scalar_lea.vmem %s461_s2, %s427_s13 }
  0x10   : > { %v201_v2 = vsel %vm200_vm1, %v187_v1, -inf  ;;  %v188_v4 = vld [vmem:[%s174_s19] sm:$0xff] }
  0x11   : > { %202 = vmax.xlane.f32.xlu0 %v201_v2  ;;  %195 = vperm.xlu1 %358, %v188_v4  }
  0x14   : > { %v199_v6 = vld [vmem:[#allocation2] sm:$0xff] }
  0x15   : > { %v205_v24 = vld [vmem:[#allocation3] sm:$0xff]  ;;  %v224_v28 = vld [vmem:[#allocation4] sm:$0xff] }
  0x8c   : > { %v196_v15 = vpop.permute.xlu1 %195 }
  0x8d   : > { %vm197_vm2 = vcmp.eq.s32.totalorder %v191_v14, %v196_v15 }
  0x8e   : > { %v198_v17 = vsel %vm197_vm2, 0.9, %v392_v16 }
  0x8f   : > { %v225_v18 = vmul.f32 %v198_v17, %v187_v1 }
  0x91   : > { %v226_v21 = vsel %vm200_vm1, %v225_v18, 0.0 }
  0x9a   : > { %v203_v7 = vpop.xlane.xlu0 %202 }
  0x9b   : > { %v204_v8 = vmax.f32 %v199_v6, %v203_v7 }
  0x9d   : > { %v206_v9 = vsub.f32 %v199_v6, %v204_v8  ;;  %231 = vst.msk [vmem:[#allocation2] sm:$0xff] %vm183_vm0, %v204_v8  ;;  %212 = vperm.xlu0 %357, %v204_v8  }
  0x9f   : > { %v207_v22 = vmul.f32 1.442695, %v206_v9 }
  0xa4   : > { %v235_v34 = vld [vmem:[#allocation2] sm:$0xff] }
 0x118   : > { %v213_v10 = vpop.permute.xlu0 %212 }
 0x119   : > { %v215_v11 = vsub.f32 %v187_v1, %v213_v10 }
 0x11b   : > { %v216_v12 = vmul.f32 1.442695, %v215_v11 }
 0x11d   : > { %359 = vpow2.f32 %v216_v12 }
 0x11e   : > { %361 = vpow2.f32 %v207_v22 }
 0x12a   : > { %v360_v19 = vpop.eup %359 }
 0x12b   : > { %v218_v20 = vsel %vm200_vm1, %v360_v19, 0.0  ;;  %v362_v23 = vpop.eup %361 }
 0x12c   : > { %219 = vadd.xlane.f32.xlu1 %v218_v20  ;;  %v209_v25 = vmul.f32 %v362_v23, %v205_v24 }
 0x130   : > { %227 = vadd.xlane.f32.xlu1 %v226_v21 }
 0x1b5   : > { %v220_v26 = vpop.xlane.xlu1 %219 }
 0x1b6   : > { %v221_v27 = vadd.f32 %v220_v26, %v209_v25 }
 0x1b8   : > { %223 = vst.msk [vmem:[#allocation3] sm:$0xff] %vm183_vm0, %v221_v27 }
 0x1b9   : > { %v228_v29 = vpop.xlane.xlu1 %227 }
 0x1ba   : > { %v229_v30 = vadd.f32 %v228_v29, %v224_v28 }
 0x1bc   : > { %230 = vst.msk [vmem:[#allocation4] sm:$0xff] %vm183_vm0, %v229_v30 }
 0x1bf   : > { %v236_v31 = vld [vmem:[#allocation3] sm:$0xff] }
 0x1c0   : > { %363 = vlog2.f32 %v236_v31 }
 0x1c3   : > { %v240_v35 = vld [vmem:[#allocation4] sm:$0xff] }
 0x1cd   : > { %v364_v32 = vpop.eup %363 }
 0x1ce   : > { %v238_v33 = vmul.f32 0.6931472, %v364_v32 }
 0x1d0   : > { %v239_v36 = vadd.f32 %v238_v33, %v235_v34 }
 0x1d2   : > { %v241_v37 = vsub.f32 %v239_v36, %v240_v35 }
 0x1d4   : > { %242 = vst.msk [vmem:[%s178_s22] sm:$0xff] %vm183_vm0, %v241_v37 }
 0x1d5 PF: > { %s12_s11 = sadd.s32 1, %s387_s11   ;;  %s462_s9 = smov %s383_s10 }
 0x1d6   : > { %p9_p5 = scmp.ge.s32.totalorder %s12_s11, 4   ;;  %s463_s10 = smov %s465_s12 }
 0x1d8   :  { %11 = sbr.rel (!%p9_p5) target bundleno = 2 (0x2), region = 69 }

</bundles_post_ra>
